<compile_context>
chip_gen: v7x
topology: tpu7x:2x2x1
jax: 0.10.0
libtpu: 0.0.40
codegen_flags: <defaults>
</compile_context>

<pallas_src>
import jax
import jax.numpy as jnp
from jax.experimental import pallas as pl
from jax.experimental.pallas import tpu as pltpu

# ----- small, TPU-friendly shapes consistent with the module -----
N = 256         # number of instances (rows of x)  -> grid of 2 parallel steps
L = 256         # input feature dim  (PyTorch default L=1024, scaled down)
D = 128         # gated hidden dim   (PyTorch default D=256, scaled down)
N_TASKS = 1
TILE_N = 128    # rows per grid step (sweep 256..1024 for production bag sizes)


def gated_attn_kernel(x_ref, wab_ref, bab_ref, wct_ref, bc_ref, a_ref):
    x = x_ref[...]                                              # [TILE_N, L] f32
    # fused branch projection: one bf16 MXU matmul, f32 accumulation
    ab = jnp.dot(x.astype(jnp.bfloat16), wab_ref[...],
                 preferred_element_type=jnp.float32) + bab_ref[...]   # [TILE_N, 2D] f32
    a = jnp.tanh(ab[:, :D])                                     # tanh branch (EUP)
    # sigmoid(z) = 0.5 * tanh(0.5 * z) + 0.5  -> single EUP op per element
    b = 0.5 * jnp.tanh(0.5 * ab[:, D:]) + 0.5                   # sigmoid branch
    gated = a * b                                               # [TILE_N, D] f32
    # n_tasks == 1: VPU multiply + lane reduce instead of a [.,D]@[D,1] matmul
    a_ref[...] = (jnp.sum(gated * wct_ref[...], axis=-1, keepdims=True)
                  + bc_ref[...])                                # [TILE_N, 1]


def attn_net_gated(x, wab, bab, wct, bc):
    """Fused forward. Returns (A, x) like the PyTorch module."""
    n, l = x.shape
    d2 = wab.shape[1]
    n_tasks, d = wct.shape
    assert n_tasks == 1, "only the module-default n_tasks=1 path is implemented"
    assert d2 == 2 * d
    grid = (pl.cdiv(n, TILE_N),)
    A = pl.pallas_call(
        gated_attn_kernel,
        out_shape=jax.ShapeDtypeStruct((n, n_tasks), jnp.float32),
        grid=grid,
        in_specs=[pl.BlockSpec((TILE_N, l), lambda i: (i, 0)),      # x rows (f32)
                  pl.BlockSpec((l, d2), lambda i: (0, 0)),          # [Wa | Wb] (bf16)
                  pl.BlockSpec((1, d2), lambda i: (0, 0)),          # [ba | bb] (f32)
                  pl.BlockSpec((n_tasks, d), lambda i: (0, 0)),     # Wc^T (f32)
                  pl.BlockSpec((1, n_tasks), lambda i: (0, 0))],    # bc (f32)
        out_specs=pl.BlockSpec((TILE_N, n_tasks), lambda i: (i, 0)),
        compiler_params=pltpu.CompilerParams(dimension_semantics=("parallel",)),
    )(x, wab, bab, wct, bc)
    return A, x


def init_params(key):
    ks = jax.random.split(key, 6)

    def nrm(k, shape, std=0.02):
        return (std * jax.random.normal(k, shape)).astype(jnp.float32)

    wa = nrm(ks[0], (L, D))
    ba = nrm(ks[1], (1, D), std=0.01)
    wb = nrm(ks[2], (L, D))
    bb = nrm(ks[3], (1, D), std=0.01)
    wc = nrm(ks[4], (D, N_TASKS))
    bc = nrm(ks[5], (1, N_TASKS), std=0.01)
    # pack the two branch projections into one bf16 slab (single MXU push)
    wab = jnp.concatenate([wa, wb], axis=1).astype(jnp.bfloat16)   # [L, 2D] bf16
    bab = jnp.concatenate([ba, bb], axis=1)                        # [1, 2D] f32
    wct = wc.T                                                     # [N_TASKS, D] f32
    return {'wab': wab, 'bab': bab, 'wct': wct, 'bc': bc,
            'wa': wa, 'ba': ba, 'wb': wb, 'bb': bb, 'wc': wc}


@jax.jit
def forward(x, params):
    return attn_net_gated(x, params['wab'], params['bab'],
                          params['wct'], params['bc'])


if __name__ == "__main__":
    key = jax.random.PRNGKey(0)
    pkey, xkey = jax.random.split(key)
    params = init_params(pkey)
    x = jax.random.normal(xkey, (N, L), dtype=jnp.float32)

    A, x_out = forward(x, params)
    jax.block_until_ready((A, x_out))

    # tight reference: same bf16 matmul operands / f32 accumulation as the kernel
    ab_m = jnp.dot(x.astype(jnp.bfloat16), params['wab'],
                   preferred_element_type=jnp.float32) + params['bab']
    A_match = ((jnp.tanh(ab_m[:, :D]) * jax.nn.sigmoid(ab_m[:, D:]))
               @ params['wc'] + params['bc'])

    # loose reference: full-f32 PyTorch-module semantics
    a_full = jnp.tanh(x @ params['wa'] + params['ba'])
    b_full = jax.nn.sigmoid(x @ params['wb'] + params['bb'])
    A_full = (a_full * b_full) @ params['wc'] + params['bc']

    assert A.shape == (N, N_TASKS), A.shape
    assert x_out.shape == x.shape
    assert jnp.array_equal(x_out, x)
    assert jnp.allclose(A, A_match, atol=1e-4, rtol=1e-4), float(
        jnp.max(jnp.abs(A - A_match)))
    assert jnp.allclose(A, A_full, atol=5e-3, rtol=5e-2), float(
        jnp.max(jnp.abs(A - A_full)))
    print("KERNEL_OK")
</pallas_src>

<mosaic_0001>
module attributes {stable_mosaic.version = 11 : i64} {
  func.func @gated_attn_kernel(%arg0: i32, %arg1: memref<128x256xf32, #tpu.memory_space<vmem>>, %arg2: memref<256x256xbf16, #tpu.memory_space<vmem>>, %arg3: memref<1x256xf32, #tpu.memory_space<vmem>>, %arg4: memref<1x128xf32, #tpu.memory_space<vmem>>, %arg5: memref<1x1xf32, #tpu.memory_space<vmem>>, %arg6: memref<128x1xf32, #tpu.memory_space<vmem>>) attributes {dimension_semantics = [#tpu.dimension_semantics<parallel>], iteration_bounds = array<i64: 2>, scalar_prefetch = 0 : i64, scratch_operands = 0 : i64, tpu.core_type = #tpu.core_type<tc>, window_params = [{transform_indices = @transform_0, window_bounds = array<i64: 128, 256>}, {pipeline_mode = #tpu.pipeline_mode<synchronous>, transform_indices = @transform_1, window_bounds = array<i64: 256, 256>}, {pipeline_mode = #tpu.pipeline_mode<synchronous>, transform_indices = @transform_2, window_bounds = array<i64: 1, 256>}, {pipeline_mode = #tpu.pipeline_mode<synchronous>, transform_indices = @transform_3, window_bounds = array<i64: 1, 128>}, {pipeline_mode = #tpu.pipeline_mode<synchronous>, transform_indices = @transform_4, window_bounds = array<i64: 1, 1>}, {transform_indices = @transform_5, window_bounds = array<i64: 128, 1>}]} {
    %c0 = arith.constant 0 : index
    %c0_0 = arith.constant 0 : index
    %0 = vector.load %arg1[%c0, %c0_0] : memref<128x256xf32, #tpu.memory_space<vmem>>, vector<128x256xf32>
    %1 = arith.truncf %0 : vector<128x256xf32> to vector<128x256xbf16>
    %c0_1 = arith.constant 0 : index
    %c0_2 = arith.constant 0 : index
    %2 = vector.load %arg2[%c0_1, %c0_2] : memref<256x256xbf16, #tpu.memory_space<vmem>>, vector<256x256xbf16>
    %cst = arith.constant dense<0.000000e+00> : vector<128x256xf32>
    %3 = tpu.matmul %1, %2, %cst {dimension_numbers = #tpu.dot_dimension_numbers<[1], [0], [0], [1], [0, 0, 1, 1], [], []>} : vector<128x256xbf16>, vector<256x256xbf16>, vector<128x256xf32> -> vector<128x256xf32>
    %c0_3 = arith.constant 0 : index
    %c0_4 = arith.constant 0 : index
    %4 = vector.load %arg3[%c0_3, %c0_4] : memref<1x256xf32, #tpu.memory_space<vmem>>, vector<1x256xf32>
    %5 = vector.broadcast %4 : vector<1x256xf32> to vector<128x256xf32>
    %6 = arith.addf %3, %5 : vector<128x256xf32>
    %7 = vector.extract_strided_slice %6 {offsets = [0, 0], sizes = [128, 128], strides = [1, 1]} : vector<128x256xf32> to vector<128x128xf32>
    %8 = math.tanh %7 : vector<128x128xf32>
    %9 = vector.extract_strided_slice %6 {offsets = [0, 128], sizes = [128, 128], strides = [1, 1]} : vector<128x256xf32> to vector<128x128xf32>
    %cst_5 = arith.constant 5.000000e-01 : f32
    %10 = vector.broadcast %cst_5 : f32 to vector<128x128xf32>
    %11 = arith.mulf %10, %9 : vector<128x128xf32>
    %12 = math.tanh %11 : vector<128x128xf32>
    %cst_6 = arith.constant 5.000000e-01 : f32
    %13 = vector.broadcast %cst_6 : f32 to vector<128x128xf32>
    %14 = arith.mulf %13, %12 : vector<128x128xf32>
    %cst_7 = arith.constant 5.000000e-01 : f32
    %15 = vector.broadcast %cst_7 : f32 to vector<128x128xf32>
    %16 = arith.addf %14, %15 : vector<128x128xf32>
    %17 = arith.mulf %8, %16 : vector<128x128xf32>
    %c0_8 = arith.constant 0 : index
    %c0_9 = arith.constant 0 : index
    %18 = vector.load %arg4[%c0_8, %c0_9] : memref<1x128xf32, #tpu.memory_space<vmem>>, vector<1x128xf32>
    %19 = vector.broadcast %18 : vector<1x128xf32> to vector<128x128xf32>
    %20 = arith.mulf %17, %19 : vector<128x128xf32>
    %cst_10 = arith.constant dense<0.000000e+00> : vector<128xf32>
    %21 = vector.multi_reduction <add>, %20, %cst_10 [1] : vector<128x128xf32> to vector<128xf32>
    %22 = vector.shape_cast %21 : vector<128xf32> to vector<128x1xf32>
    %c0_11 = arith.constant 0 : index
    %c0_12 = arith.constant 0 : index
    %23 = vector.load %arg5[%c0_11, %c0_12] : memref<1x1xf32, #tpu.memory_space<vmem>>, vector<1x1xf32>
    %24 = vector.broadcast %23 : vector<1x1xf32> to vector<128x1xf32>
    %25 = arith.addf %22, %24 : vector<128x1xf32>
    %c0_13 = arith.constant 0 : index
    %c0_14 = arith.constant 0 : index
    %26 = vector.load %arg6[%c0_13, %c0_14] : memref<128x1xf32, #tpu.memory_space<vmem>>, vector<128x1xf32>
    tpu.vector_store %arg6[%c0_13, %c0_14], %25 {strides = array<i32>} : memref<128x1xf32, #tpu.memory_space<vmem>>, vector<128x1xf32>,
    return
  }
  func.func @transform_0(%arg0: i32) -> (i32, i32) {
    %c0_i32 = arith.constant 0 : i32
    %c0_i32_0 = arith.constant 0 : i32
    return %arg0, %c0_i32 : i32, i32
  }
  func.func @transform_1(%arg0: i32) -> (i32, i32) {
    %c0_i32 = arith.constant 0 : i32
    %c0_i32_0 = arith.constant 0 : i32
    %c0_i32_1 = arith.constant 0 : i32
    return %c0_i32, %c0_i32_0 : i32, i32
  }
  func.func @transform_2(%arg0: i32) -> (i32, i32) {
    %c0_i32 = arith.constant 0 : i32
    %c0_i32_0 = arith.constant 0 : i32
    %c0_i32_1 = arith.constant 0 : i32
    return %c0_i32, %c0_i32_0 : i32, i32
  }
  func.func @transform_3(%arg0: i32) -> (i32, i32) {
    %c0_i32 = arith.constant 0 : i32
    %c0_i32_0 = arith.constant 0 : i32
    %c0_i32_1 = arith.constant 0 : i32
    return %c0_i32, %c0_i32_0 : i32, i32
  }
  func.func @transform_4(%arg0: i32) -> (i32, i32) {
    %c0_i32 = arith.constant 0 : i32
    %c0_i32_0 = arith.constant 0 : i32
    %c0_i32_1 = arith.constant 0 : i32
    return %c0_i32, %c0_i32_0 : i32, i32
  }
  func.func @transform_5(%arg0: i32) -> (i32, i32) {
    %c0_i32 = arith.constant 0 : i32
    %c0_i32_0 = arith.constant 0 : i32
    return %arg0, %c0_i32 : i32, i32
  }
}

</mosaic_0001>

<bundles_post_ra>
// kernel: forward.1
= control target key start
LH: loop header
LB: loop body
LE: loop exit
PB: predicated region body
PF: predicated region fallthrough
CT: control target
= control target key end

     0   :  { %s1567_s0 = inlined_call_operand.hbm [shape: f32[256,256], index: 0, kind: input, shape index: {}]   ;;  %s1568_s1 = inlined_call_operand.hbm [shape: bf16[256,256], index: 1, kind: input, shape index: {}]   ;;  %s1569_s2 = inlined_call_operand.vmem [shape: f32[1,256], index: 2, kind: input, shape index: {}]   ;;  %s1570_s3 = inlined_call_operand.vmem [shape: f32[1,128], index: 3, kind: input, shape index: {}]   ;;  %s1571_s4 = inlined_call_operand.<no memory space> [shape: f32[1,1], index: 4, kind: input, shape index: {}]   ;;  %s1572_s5 = inlined_call_operand.vmem [shape: f32[256,1], index: 5, kind: output, shape index: {}]  }
   0x1   :  { %v10_v0 = vstv %s1571_s4 }
   0x2   :  { %11 = vst [vmem:[#allocation2] sm:$0x1] %v10_v0 }
   0x3   :  { %12 = vsyncpa [#allocation4], 0 }
   0x4   :  { %14 = vsyncpa [#allocation4 + $0x1], 0 }
   0x5   :  { %15 = vsyncpa [#allocation6], 0  ;;  %s1285_s20 = smov 0   ;;  %s1287_s21 = smov 0  }
   0x6   :  { %s1289_s22 = smov 0   ;;  %s1291_s23 = smov 0  }
   0x7 LB: > { %s898_s4 = sadd.s32 4294967295, %s1244_s23   ;;  %p41_p0 = scmp.ne.s32.totalorder %s1236_s21, %s1232_s20  ;;  %s1244_s23 = sphi %s1291_s23, %s1589_s23   ;;  %s1240_s22 = sphi %s1289_s22, %s1588_s22   ;;  %s1236_s21 = sphi %s1287_s21, %s1587_s21   ;;  %s1232_s20 = sphi %s1285_s20, %s1586_s20  }
   0x8   : > { %p1307_p1 = scmp.eq.s32.totalorder %s898_s4, 0  ;;  %p900_p2 = scmp.ge.s32.totalorder %s1244_s23, 1 }
   0x9   : > { %p162_p3 = scmp.lt.s32.totalorder %s1244_s23, 3  ;;  %s1246_s27 = smov [#allocation5]  }
   0xa   : > { %s1577_s24 = scalar_select %p1307_p1, 1, 0 }
   0xb   : > { %p1315_p4 = por %p1307_p1, %p41_p0  ;;  %p1319_p5 = pnand %p900_p2, %p162_p3 }
   0xc   : > { %s174_s28 = sshll.u32 %s1246_s27, 4  ;;  %s1332_s30 = sadd.s32 1, %s1244_s23   ;;  %s175_s28 = int_to_ptr.vmem [resolvable:$true] %s174_s28 }
   0xd   : > { %s1578_s25 = scalar_select %p1315_p4, 1, 0 }
   0xe   : > { %s1579_s26 = scalar_select %p1319_p5, 1, 0 }
   0xf   : > { %p988_p6 = pneg %p1319_p5  ;;  %s28_s6 = sadd.s32 1, %s1240_s22 }
  0x10   : > { %s25_s7 = ssub.s32 %s1244_s23, %s1332_s30  ;;  %s1148_s10 = scalar_lea.hbm %s1568_s1, 4096 }
  0x11   : > { %p1327_p7 = pnand %p988_p6, %p1307_p1  ;;  %p1149_p8 = scmp.ne.s32.totalorder %s1568_s1, %s1148_s10 }
  0x12   : > { %p1155_p12 = scmp.lt.u32.totalorder %s1148_s10, %s1568_s1 }
  0x13   : > { %p1150_p9 = pneg %p1327_p7 }
  0x15   : > { %p1151_p10 = pnand %p1150_p9, %p1149_p8 }
  0x17   : > { %p1152_p11 = pneg %p1151_p10 }
  0x19   : > { %p1157_p13 = pnand %p1155_p12, %p1152_p11 }
  0x1b   : > { %1160 = shalt.err (!%p1157_p13)
}
  0x1c   : > { %s1161_s15 = scalar_lea.vmem %s175_s28, 4096  ;;  %p1169_p6 = scmp.lt.s32.totalorder %s175_s28, %s175_s28 }
  0x1d   : > { %p1162_p0 = scmp.ne.s32.totalorder %s175_s28, %s1161_s15  ;;  %p1170_p1 = scmp.lt.s32.totalorder %s1161_s15, %s1161_s15 }
  0x1f   : > { %p1164_p2 = pnand %p1162_p0, %p1150_p9  ;;  %p1171_p4 = por %p1170_p1, %p1169_p6 }
  0x21   : > { %p1165_p3 = pneg %p1164_p2 }
  0x23   : > { %p1172_p5 = pnand %p1171_p4, %p1165_p3 }
  0x25   : > { %1175 = shalt.err (!%p1172_p5)
}
  0x26   : > { %s1247_s16 = smov 128   ;;  %s1248_s17 = smov 8  }
  0x27   : > { %991 = dma.hbm_to_vmem [thread:$0]  (!%p1327_p7), %s1568_s1, 4096, %s175_s28, [#allocation6], %s1247_s16, %s1247_s16, %s1248_s17  }
  0x28   : > { %p26_p8 = scmp.eq.s32.totalorder %s25_s7, 0  ;;  %p35_p9 = scmp.ne.s32.totalorder %s1240_s22, %s1236_s21 }
  0x29   : > { %p36_p1 = scmp.eq.s32.totalorder %s1244_s23, 0  ;;  %p997_p4 = scmp.lt.s32.totalorder %s1244_s23, 2 }
  0x2a   : > { %s1358_s20 = scalar_select %p26_p8, %s1240_s22, %s28_s6  }
  0x2b   : > { %p37_p5 = por %p36_p1, %p35_p9  ;;  %s197_s27 = sand.u32 1, %s1240_s22  }
  0x2c   : > { %s903_s8 = sshll.u32 %s197_s27, 8  ;;  %s949_s9 = sshll.u32 %s1244_s23, 12 }
  0x2d   : > { %s1365_s12 = scalar_lea.hbm %s1567_s0, %s949_s9  ;;  %s201_s28 = scalar_lea.vmem [#allocation3], %s903_s8 }
  0x2e   : > { %s209_s29 = sshll.u32 %s201_s28, 4  ;;  %p1369_p7 = pnand %p997_p4, %p37_p5  ;;  %s1367_s29 = int_to_ptr.vmem [resolvable:$true] %s209_s29 }
  0x2f   : > { %s1373_s7 = scalar_lea.sflag [#allocation4], %s197_s27  ;;  %s1176_s13 = scalar_lea.hbm %s1365_s12, 4096 }
  0x30   : > { %p1177_p10 = scmp.ne.s32.totalorder %s1365_s12, %s1176_s13  ;;  %p1178_p11 = pneg %p1369_p7 }
  0x31   : > { %s1181_s16 = scalar_lea.hbm %s1567_s0, 8192  ;;  %p1182_p0 = scmp.lt.u32.totalorder %s1365_s12, %s1567_s0 }
  0x32   : > { %p1179_p12 = pnand %p1178_p11, %p1177_p10  ;;  %p1183_p2 = scmp.lt.u32.totalorder %s1181_s16, %s1176_s13 }
  0x33   : > { %p1185_p6 = scmp.lt.u32.totalorder %s1176_s13, %s1365_s12 }
  0x34   : > { %p1180_p13 = pneg %p1179_p12  ;;  %p1184_p3 = por %p1183_p2, %p1182_p0 }
  0x36   : > { %p1186_p8 = por %p1185_p6, %p1184_p3 }
  0x38   : > { %p1187_p9 = pnand %p1186_p8, %p1180_p13 }
  0x3a   : > { %1190 = shalt.err (!%p1187_p9)
}
  0x3b   : > { %s1191_s19 = scalar_lea.vmem %s1367_s29, 4096  ;;  %s1249_s27 = smov [#allocation3]  }
  0x3c   : > { %p1192_p1 = scmp.ne.s32.totalorder %s1367_s29, %s1191_s19  ;;  %s1196_s8 = sshll.u32 %s1249_s27, 4  ;;  %s1197_s8 = int_to_ptr.vmem [resolvable:$false] %s1196_s8 }
  0x3d   : > { %s1198_s9 = scalar_lea.vmem %s1197_s8, 8192  ;;  %p1199_p10 = scmp.lt.s32.totalorder %s1367_s29, %s1197_s8 }
  0x3e   : > { %p1194_p4 = pnand %p1192_p1, %p1178_p11  ;;  %p1200_p12 = scmp.lt.s32.totalorder %s1198_s9, %s1191_s19 }
  0x40   : > { %p1195_p5 = pneg %p1194_p4  ;;  %p1201_p0 = por %p1200_p12, %p1199_p10 }
  0x42   : > { %p1202_p2 = pnand %p1201_p0, %p1195_p5 }
  0x44   : > { %1205 = shalt.err (!%p1202_p2)
}
  0x45   : > { %s1250_s10 = smov 256   ;;  %s1251_s11 = smov 16  }
  0x46   : > { %995 = dma.hbm_to_vmem [thread:$0]  (!%p1369_p7), %s1365_s12, 4096, %s1367_s29, %s1373_s7, %s1250_s10, %s1250_s10, %s1251_s11  }
  0x47   : > { %p1582_p11 = scmp.ne.s32.totalorder %s1579_s26, 0 }
  0x48   : > { %s223_s28 = sand.u32 (!%p1582_p11), 1, %s1236_s21   ;;  %p1583_p13 = scmp.ne.s32.totalorder (!%p1582_p11), %s1578_s25, 0 }
  0x49   : > { %221 = sbr.rel (%p1582_p11) target bundleno = 565 (0x235), region = 40  ;;  %s908_s13 = sshll.u32 (!%p1582_p11), %s223_s28, 8 }
  0x4a   : > { %s224_s14 = scalar_lea.sflag (!%p1582_p11), [#allocation4], %s223_s28  ;;  %s1404_s15 = scalar_lea.vmem (!%p1582_p11), [#allocation3], %s908_s13 }
  0x50   : > { %1223 = dma.done.wait (%p1583_p13), %s224_s14, 4096  }
  0x51   : > { %1225 = vsyncadd (%p1583_p13), %s224_s14, 4294963200  ;;  %p1584_p3 = scmp.ne.s32.totalorder %s1577_s24, 0 }
  0x53   : > { %1227 = dma.done.wait (%p1584_p3), [#allocation6], 4096  }
  0x54   : > { %1229 = vsyncadd (%p1584_p3), [#allocation6], 4294963200  ;;  %v1036_v1 = vld [vmem:[#allocation5 + $0x4] ss:$8 sps:$4 sm:$0xff]   ;;  %v1038_v2 = vld [vmem:[#allocation5] ss:$8 sps:$4 sm:$0xff]  }
  0x55   : > { %517 = vmatprep.subr.bf16.mxu0 %v1036_v1  ;;  %950 = vmatprep.subr.bf16.mxu1 %v1036_v1  ;;  %v1039_v3 = vld [vmem:[#allocation5 + $0x14] ss:$8 sps:$4 sm:$0xff]   ;;  %v1041_v4 = vld [vmem:[#allocation5 + $0x10] ss:$8 sps:$4 sm:$0xff]   ;;  %v1042_v5 = vld [vmem:[#allocation5 + $0x24] ss:$8 sps:$4 sm:$0xff]  }
  0x56   : > { %518 = vmatpush1.bf16.msra.mxu0 %v1038_v2  ;;  %966 = vmatpush1.bf16.msra.mxu1 %v1038_v2  ;;  %v1044_v6 = vld [vmem:[#allocation5 + $0x20] ss:$8 sps:$4 sm:$0xff]   ;;  %v1045_v7 = vld [vmem:[#allocation5 + $0x34] ss:$8 sps:$4 sm:$0xff]   ;;  %v1047_v8 = vld [vmem:[#allocation5 + $0x30] ss:$8 sps:$4 sm:$0xff]  }
  0x57   : > { %519 = vmatprep.subr.bf16.mxu0 %v1039_v3  ;;  %951 = vmatprep.subr.bf16.mxu1 %v1039_v3  ;;  %v1048_v9 = vld [vmem:[#allocation5 + $0x44] ss:$8 sps:$4 sm:$0xff]   ;;  %v1050_v10 = vld [vmem:[#allocation5 + $0x40] ss:$8 sps:$4 sm:$0xff]   ;;  %v1051_v11 = vld [vmem:[#allocation5 + $0x54] ss:$8 sps:$4 sm:$0xff]  }
  0x58   : > { %v1053_v12 = vld [vmem:[#allocation5 + $0x50] ss:$8 sps:$4 sm:$0xff]   ;;  %v1054_v13 = vld [vmem:[#allocation5 + $0x64] ss:$8 sps:$4 sm:$0xff]   ;;  %v1056_v19 = vld [vmem:[#allocation5 + $0x60] ss:$8 sps:$4 sm:$0xff]  }
  0x59   : > { %v266_v14 = vld [vmem:[%s1404_s15 + $0x8] sm:$0xff]  ;;  %v268_v15 = vld [vmem:[%s1404_s15 + $0x18] sm:$0xff]  ;;  %v265_v39 = vld [vmem:[%s1404_s15] sm:$0xff]  ;;  %s910_s29 = sshll.u32 %s898_s4, 4  ;;  %vm804_vm0 = vcmask 7168  }
  0x5a   : > { %520 = vmatpush1.bf16.msra.mxu0 %v1041_v4  ;;  %967 = vmatpush1.bf16.msra.mxu1 %v1041_v4  ;;  %v298_v16 = vpack.c.bf16 %v268_v15, %v266_v14  ;;  %v282_v17 = vld [vmem:[%s1404_s15 + $0x88] sm:$0xff]  ;;  %v284_v18 = vld [vmem:[%s1404_s15 + $0x98] sm:$0xff]  ;;  %v267_v40 = vld [vmem:[%s1404_s15 + $0x10] sm:$0xff]  ;;  %p260_p7 = scmp.lt.s32.totalorder %s910_s29, 31 }
  0x5b   : > { %521 = vmatprep.subr.bf16.mxu0 %v1042_v5  ;;  %952 = vmatprep.subr.bf16.mxu1 %v1042_v5  ;;  %v306_v20 = vpack.c.bf16 %v284_v18, %v282_v17  ;;  %v1057_v21 = vld [vmem:[#allocation5 + $0x74] ss:$8 sps:$4 sm:$0xff]   ;;  %v1059_v22 = vld [vmem:[#allocation5 + $0x70] ss:$8 sps:$4 sm:$0xff]   ;;  %v1060_v23 = vld [vmem:[#allocation5 + $0x84] ss:$8 sps:$4 sm:$0xff]   ;;  %v297_v47 = vpack.c.bf16 %v267_v40, %v265_v39  ;;  %v347_v17 = vlaneseq }
  0x5c   : > { %549 = vmatprep.mubr.bf16.mxu0 %v298_v16  ;;  %v1062_v24 = vld [vmem:[#allocation5 + $0x80] ss:$8 sps:$4 sm:$0xff]   ;;  %v1063_v25 = vld [vmem:[#allocation5 + $0x94] ss:$8 sps:$4 sm:$0xff]   ;;  %v1065_v26 = vld [vmem:[#allocation5 + $0x90] ss:$8 sps:$4 sm:$0xff]  }
  0x5d   : > { %589 = vmatprep.mubr.bf16.mxu1 %v306_v20  ;;  %v1066_v27 = vld [vmem:[#allocation5 + $0xa4] ss:$8 sps:$4 sm:$0xff]   ;;  %v1068_v28 = vld [vmem:[#allocation5 + $0xa0] ss:$8 sps:$4 sm:$0xff]   ;;  %v1069_v29 = vld [vmem:[#allocation5 + $0xb4] ss:$8 sps:$4 sm:$0xff]  }
  0x5e   : > { %522 = vmatpush1.bf16.msra.mxu0 %v1044_v6  ;;  %968 = vmatpush1.bf16.msra.mxu1 %v1044_v6  ;;  %v1071_v30 = vld [vmem:[#allocation5 + $0xb0] ss:$8 sps:$4 sm:$0xff]   ;;  %v1072_v31 = vld [vmem:[#allocation5 + $0xc4] ss:$8 sps:$4 sm:$0xff]   ;;  %v1074_v32 = vld [vmem:[#allocation5 + $0xc0] ss:$8 sps:$4 sm:$0xff]  }
  0x5f   : > { %523 = vmatprep.subr.bf16.mxu0 %v1045_v7  ;;  %953 = vmatprep.subr.bf16.mxu1 %v1045_v7  ;;  %v1075_v33 = vld [vmem:[#allocation5 + $0xd4] ss:$8 sps:$4 sm:$0xff]   ;;  %v1077_v34 = vld [vmem:[#allocation5 + $0xd0] ss:$8 sps:$4 sm:$0xff]   ;;  %v1078_v35 = vld [vmem:[#allocation5 + $0xe4] ss:$8 sps:$4 sm:$0xff]  }
  0x60   : > { %v1080_v36 = vld [vmem:[#allocation5 + $0xe0] ss:$8 sps:$4 sm:$0xff]   ;;  %v1081_v37 = vld [vmem:[#allocation5 + $0xf4] ss:$8 sps:$4 sm:$0xff]   ;;  %v1083_v38 = vld [vmem:[#allocation5 + $0xf0] ss:$8 sps:$4 sm:$0xff]  }
  0x61   : > { %v281_v41 = vld [vmem:[%s1404_s15 + $0x80] sm:$0xff]  ;;  %v283_v42 = vld [vmem:[%s1404_s15 + $0x90] sm:$0xff]  ;;  %v270_v43 = vld [vmem:[%s1404_s15 + $0x28] sm:$0xff]  ;;  %v348_v18 = vshrl.u32 %v347_v17, 7  ;;  %s1591_s29 = smov (!%p260_p7, %s910_s29), 31 }
  0x62   : > { %524 = vmatpush1.bf16.msra.mxu0 %v1047_v8  ;;  %969 = vmatpush1.bf16.msra.mxu1 %v1047_v8  ;;  %v272_v44 = vld [vmem:[%s1404_s15 + $0x38] sm:$0xff]  ;;  %v286_v45 = vld [vmem:[%s1404_s15 + $0xa8] sm:$0xff]  ;;  %v305_v48 = vpack.c.bf16 %v283_v42, %v281_v41  ;;  %v269_v51 = vld [vmem:[%s1404_s15 + $0x20] sm:$0xff]  ;;  %s911_s6 = sshll.u32 %s1591_s29, 3 }
  0x63   : > { %525 = vmatprep.subr.bf16.mxu0 %v1048_v9  ;;  %954 = vmatprep.subr.bf16.mxu1 %v1048_v9  ;;  %v288_v46 = vld [vmem:[%s1404_s15 + $0xb8] sm:$0xff]  ;;  %v300_v49 = vpack.c.bf16 %v272_v44, %v270_v43  ;;  %v271_v52 = vld [vmem:[%s1404_s15 + $0x30] sm:$0xff]  ;;  %v285_v53 = vld [vmem:[%s1404_s15 + $0xa0] sm:$0xff]  ;;  %s1520_s17 = scalar_lea.vmem %s1572_s5, %s911_s6 }
  0x64   : > { %v308_v50 = vpack.c.bf16 %v288_v46, %v286_v45  ;;  %v287_v54 = vld [vmem:[%s1404_s15 + $0xb0] sm:$0xff]  ;;  %v274_v55 = vld [vmem:[%s1404_s15 + $0x48] sm:$0xff]  ;;  %v276_v56 = vld [vmem:[%s1404_s15 + $0x58] sm:$0xff]  ;;  %v299_v59 = vpack.c.bf16 %v271_v52, %v269_v51 }
  0x65   : > { %v290_v57 = vld [vmem:[%s1404_s15 + $0xc8] sm:$0xff]  ;;  %v292_v58 = vld [vmem:[%s1404_s15 + $0xd8] sm:$0xff]  ;;  %v307_v60 = vpack.c.bf16 %v287_v54, %v285_v53  ;;  %v302_v61 = vpack.c.bf16 %v276_v56, %v274_v55  ;;  %v273_v63 = vld [vmem:[%s1404_s15 + $0x40] sm:$0xff] }
  0x66   : > { %526 = vmatpush1.bf16.msra.mxu0 %v1050_v10  ;;  %970 = vmatpush1.bf16.msra.mxu1 %v1050_v10  ;;  %v310_v62 = vpack.c.bf16 %v292_v58, %v290_v57  ;;  %v275_v0 = vld [vmem:[%s1404_s15 + $0x50] sm:$0xff]  ;;  %v289_v1 = vld [vmem:[%s1404_s15 + $0xc0] sm:$0xff]  ;;  %v278_v3 = vld [vmem:[%s1404_s15 + $0x68] sm:$0xff] }
  0x67   : > { %527 = vmatprep.subr.bf16.mxu0 %v1051_v11  ;;  %955 = vmatprep.subr.bf16.mxu1 %v1051_v11  ;;  %v291_v2 = vld [vmem:[%s1404_s15 + $0xd0] sm:$0xff]  ;;  %v280_v4 = vld [vmem:[%s1404_s15 + $0x78] sm:$0xff]  ;;  %v294_v5 = vld [vmem:[%s1404_s15 + $0xe8] sm:$0xff]  ;;  %v301_v7 = vpack.c.bf16 %v275_v0, %v273_v63 }
  0x68   : > { %v296_v6 = vld [vmem:[%s1404_s15 + $0xf8] sm:$0xff]  ;;  %v309_v8 = vpack.c.bf16 %v291_v2, %v289_v1  ;;  %v304_v9 = vpack.c.bf16 %v280_v4, %v278_v3  ;;  %v277_v11 = vld [vmem:[%s1404_s15 + $0x60] sm:$0xff]  ;;  %v295_v14 = vld [vmem:[%s1404_s15 + $0xf0] sm:$0xff] }
  0x69   : > { %v312_v10 = vpack.c.bf16 %v296_v6, %v294_v5  ;;  %v345_v20 = vld [vmem:[%s1569_s2] sm:$0x3] }
  0x6a   : > { %528 = vmatpush1.bf16.msra.mxu0 %v1053_v12  ;;  %971 = vmatpush1.bf16.msra.mxu1 %v1053_v12  ;;  %v279_v12 = vld [vmem:[%s1404_s15 + $0x70] sm:$0xff] }
  0x6b   : > { %529 = vmatprep.subr.bf16.mxu0 %v1054_v13  ;;  %956 = vmatprep.subr.bf16.mxu1 %v1054_v13  ;;  %v293_v13 = vld [vmem:[%s1404_s15 + $0xe0] sm:$0xff]  ;;  %v303_v15 = vpack.c.bf16 %v279_v12, %v277_v11 }
  0x6c   : > { %v311_v16 = vpack.c.bf16 %v295_v14, %v293_v13 }
  0x6e   : > { %530 = vmatpush1.bf16.msra.mxu0 %v1056_v19  ;;  %972 = vmatpush1.bf16.msra.mxu1 %v1056_v19  ;;  %v349_v19 = vsub.s32 0, %v348_v18 }
  0x6f   : > { %531 = vmatprep.subr.bf16.mxu0 %v1057_v21  ;;  %957 = vmatprep.subr.bf16.mxu1 %v1057_v21  ;;  %v353_v21 = vsub.s32 1, %v348_v18 }
  0x72   : > { %532 = vmatpush1.bf16.msra.mxu0 %v1059_v22  ;;  %973 = vmatpush1.bf16.msra.mxu1 %v1059_v22  ;;  %v1449_v22 = vrot.slane %v345_v20, %v349_v19 }
  0x73   : > { %533 = vmatprep.subr.bf16.mxu0 %v1060_v23  ;;  %958 = vmatprep.subr.bf16.mxu1 %v1060_v23  ;;  %v1451_v23 = vrot.slane %v345_v20, %v353_v21 }
  0x76   : > { %534 = vmatpush1.bf16.msra.mxu0 %v1062_v24  ;;  %974 = vmatpush1.bf16.msra.mxu1 %v1062_v24 }
  0x77   : > { %535 = vmatprep.subr.bf16.mxu0 %v1063_v25  ;;  %959 = vmatprep.subr.bf16.mxu1 %v1063_v25 }
  0x7a   : > { %536 = vmatpush1.bf16.msra.mxu0 %v1065_v26  ;;  %975 = vmatpush1.bf16.msra.mxu1 %v1065_v26 }
  0x7b   : > { %537 = vmatprep.subr.bf16.mxu0 %v1066_v27  ;;  %960 = vmatprep.subr.bf16.mxu1 %v1066_v27 }
  0x7e   : > { %538 = vmatpush1.bf16.msra.mxu0 %v1068_v28  ;;  %976 = vmatpush1.bf16.msra.mxu1 %v1068_v28 }
  0x7f   : > { %539 = vmatprep.subr.bf16.mxu0 %v1069_v29  ;;  %961 = vmatprep.subr.bf16.mxu1 %v1069_v29 }
  0x82   : > { %540 = vmatpush1.bf16.msra.mxu0 %v1071_v30  ;;  %977 = vmatpush1.bf16.msra.mxu1 %v1071_v30 }
  0x83   : > { %541 = vmatprep.subr.bf16.mxu0 %v1072_v31  ;;  %962 = vmatprep.subr.bf16.mxu1 %v1072_v31 }
  0x86   : > { %542 = vmatpush1.bf16.msra.mxu0 %v1074_v32  ;;  %978 = vmatpush1.bf16.msra.mxu1 %v1074_v32 }
  0x87   : > { %543 = vmatprep.subr.bf16.mxu0 %v1075_v33  ;;  %963 = vmatprep.subr.bf16.mxu1 %v1075_v33 }
  0x8a   : > { %544 = vmatpush1.bf16.msra.mxu0 %v1077_v34  ;;  %979 = vmatpush1.bf16.msra.mxu1 %v1077_v34 }
  0x8b   : > { %545 = vmatprep.subr.bf16.mxu0 %v1078_v35  ;;  %964 = vmatprep.subr.bf16.mxu1 %v1078_v35 }
  0x8e   : > { %546 = vmatpush1.bf16.msra.mxu0 %v1080_v36  ;;  %980 = vmatpush1.bf16.msra.mxu1 %v1080_v36 }
  0x8f   : > { %547 = vmatprep.subr.bf16.mxu0 %v1081_v37  ;;  %965 = vmatprep.subr.bf16.mxu1 %v1081_v37 }
  0x92   : > { %548 = vmatpush1.bf16.msra.mxu0 %v1083_v38  ;;  %981 = vmatpush1.bf16.msra.mxu1 %v1083_v38 }
  0x95   : > { %550 = vmatmul.mubr.bf16.vlgmr.msra.gmra.mrb[0].mxu0 %v297_v47  ;;  %590 = vmatmul.mubr.bf16.vlgmr.msra.gmra.mrb[0].mxu1 %v305_v48 }
  0x96   : > { %559 = vmatprep.mubr.bf16.mxu0 %v300_v49  ;;  %599 = vmatprep.mubr.bf16.mxu1 %v308_v50 }
  0x9d   : > { %560 = vmatmul.mubr.bf16.gmra.mrb[4].mxu0 %v299_v59  ;;  %600 = vmatmul.mubr.bf16.gmra.mrb[4].mxu1 %v307_v60 }
  0x9e   : > { %569 = vmatprep.mubr.bf16.mxu0 %v302_v61  ;;  %609 = vmatprep.mubr.bf16.mxu1 %v310_v62 }
  0xa5   : > { %570 = vmatmul.mubr.bf16.gmra.mrb[8].mxu0 %v301_v7  ;;  %610 = vmatmul.mubr.bf16.gmra.mrb[8].mxu1 %v309_v8 }
  0xa6   : > { %579 = vmatprep.mubr.bf16.mxu0 %v304_v9  ;;  %619 = vmatprep.mubr.bf16.mxu1 %v312_v10 }
  0xad   : > { %580 = vmatmul.mubr.bf16.gmra.mrb[12].mxu0 %v303_v15  ;;  %620 = vmatmul.mubr.bf16.gmra.mrb[12].mxu1 %v311_v16 }
 0x168   : > { %v551_v24 = vpop.f32.mrb[0].mxu0  ;;  %v591_v25 = vpop.f32.mrb[0].mxu1 }
 0x169   : > { %v552_v26 = vadd.f32 %v551_v24, %v1449_v22  ;;  %v592_v27 = vadd.f32 %v591_v25, %v1449_v22  ;;  %v553_v28 = vpop.f32.mrb[1].mxu0  ;;  %v593_v29 = vpop.f32.mrb[1].mxu1 }
 0x16a   : > { %v554_v30 = vadd.f32 %v553_v28, %v1451_v23  ;;  %v594_v31 = vadd.f32 %v593_v29, %v1451_v23  ;;  %v555_v32 = vpop.f32.mrb[2].mxu0  ;;  %v595_v33 = vpop.f32.mrb[2].mxu1 }
 0x16b   : > { %1084 = vtanh.f32 %v552_v26  ;;  %v556_v34 = vadd.f32 %v555_v32, %v1449_v22  ;;  %v596_v35 = vadd.f32 %v595_v33, %v1449_v22  ;;  %v557_v36 = vpop.f32.mrb[3].mxu0  ;;  %v597_v37 = vpop.f32.mrb[3].mxu1  ;;  %v1482_v33 = vld [vmem:[%s1570_s3] ss:$0 sm:$0xff] }
 0x16c   : > { %1086 = vtanh.f32 %v592_v27  ;;  %v646_v38 = vmul.f32 0.5, %v554_v30  ;;  %v654_v39 = vmul.f32 0.5, %v594_v31  ;;  %v558_v40 = vadd.f32 %v557_v36, %v1451_v23 }
 0x16d   : > { %1088 = vtanh.f32 %v556_v34  ;;  %v598_v41 = vadd.f32 %v597_v37, %v1451_v23 }
 0x16e   : > { %1090 = vtanh.f32 %v646_v38  ;;  %v647_v42 = vmul.f32 0.5, %v558_v40 }
 0x16f   : > { %1092 = vtanh.f32 %v654_v39  ;;  %v655_v43 = vmul.f32 0.5, %v598_v41 }
 0x170   : > { %1094 = vtanh.f32 %v596_v35  ;;  %v561_v44 = vpop.f32.mrb[4].mxu0  ;;  %v601_v45 = vpop.f32.mrb[4].mxu1 }
 0x171   : > { %1096 = vtanh.f32 %v647_v42  ;;  %v562_v46 = vadd.f32 %v561_v44, %v1449_v22  ;;  %v602_v47 = vadd.f32 %v601_v45, %v1449_v22  ;;  %v563_v48 = vpop.f32.mrb[5].mxu0  ;;  %v603_v49 = vpop.f32.mrb[5].mxu1 }
 0x172   : > { %1098 = vtanh.f32 %v655_v43  ;;  %v564_v50 = vadd.f32 %v563_v48, %v1451_v23  ;;  %v604_v51 = vadd.f32 %v603_v49, %v1451_v23  ;;  %v565_v52 = vpop.f32.mrb[6].mxu0  ;;  %v605_v53 = vpop.f32.mrb[6].mxu1 }
 0x173   : > { %1100 = vtanh.f32 %v562_v46  ;;  %v566_v54 = vadd.f32 %v565_v52, %v1449_v22  ;;  %v606_v55 = vadd.f32 %v605_v53, %v1449_v22  ;;  %v567_v56 = vpop.f32.mrb[7].mxu0  ;;  %v607_v57 = vpop.f32.mrb[7].mxu1 }
 0x174   : > { %1102 = vtanh.f32 %v602_v47  ;;  %v648_v58 = vmul.f32 0.5, %v564_v50  ;;  %v656_v59 = vmul.f32 0.5, %v604_v51  ;;  %v568_v60 = vadd.f32 %v567_v56, %v1451_v23 }
 0x175   : > { %v1085_v61 = vpop.eup %1084  ;;  %1104 = vtanh.f32 %v566_v54  ;;  %v608_v62 = vadd.f32 %v607_v57, %v1451_v23 }
 0x176   : > { %v1087_v63 = vpop.eup %1086  ;;  %1106 = vtanh.f32 %v648_v58  ;;  %v649_v0 = vmul.f32 0.5, %v568_v60 }
 0x177   : > { %v1089_v1 = vpop.eup %1088  ;;  %1108 = vtanh.f32 %v656_v59  ;;  %v657_v2 = vmul.f32 0.5, %v608_v62 }
 0x178   : > { %v1091_v3 = vpop.eup %1090  ;;  %1110 = vtanh.f32 %v606_v55  ;;  %v571_v4 = vpop.f32.mrb[8].mxu0 }
 0x179   : > { %v611_v5 = vpop.f32.mrb[8].mxu1  ;;  %v1093_v6 = vpop.eup %1092  ;;  %v678_v7 = vmul.f32 0.5, %v1091_v3  ;;  %1112 = vtanh.f32 %v649_v0  ;;  %v572_v8 = vadd.f32 %v571_v4, %v1449_v22 }
 0x17a   : > { %v612_v9 = vadd.f32 %v611_v5, %v1449_v22  ;;  %v573_v10 = vpop.f32.mrb[9].mxu0  ;;  %v613_v11 = vpop.f32.mrb[9].mxu1  ;;  %v686_v13 = vmul.f32 0.5, %v1093_v6  ;;  %1114 = vtanh.f32 %v657_v2 }
 0x17b   : > { %v1471_v12 = vpop.eup %1094  ;;  %v574_v14 = vadd.f32 %v573_v10, %v1451_v23  ;;  %v614_v15 = vadd.f32 %v613_v11, %v1451_v23  ;;  %v575_v16 = vpop.f32.mrb[10].mxu0  ;;  %1116 = vtanh.f32 %v572_v8  ;;  %v694_v21 = vadd.f32 0.5, %v678_v7 }
 0x17c   : > { %v615_v17 = vpop.f32.mrb[10].mxu1  ;;  %v1097_v18 = vpop.eup %1096  ;;  %v702_v25 = vadd.f32 0.5, %v686_v13  ;;  %v576_v28 = vadd.f32 %v575_v16, %v1449_v22  ;;  %1118 = vtanh.f32 %v612_v9 }
 0x17d   : > { %v577_v19 = vpop.f32.mrb[11].mxu0  ;;  %v617_v20 = vpop.f32.mrb[11].mxu1  ;;  %v679_v26 = vmul.f32 0.5, %v1097_v18  ;;  %v650_v27 = vmul.f32 0.5, %v574_v14  ;;  %v658_v31 = vmul.f32 0.5, %v614_v15  ;;  %v710_v37 = vmul.f32 %v1085_v61, %v694_v21 }
 0x17e   : > { %v1099_v24 = vpop.eup %1098  ;;  %v578_v32 = vadd.f32 %v577_v19, %v1451_v23  ;;  %v618_v36 = vadd.f32 %v617_v20, %v1451_v23  ;;  %v616_v39 = vadd.f32 %v615_v17, %v1449_v22  ;;  %v718_v41 = vmul.f32 %v1087_v63, %v702_v25 }
 0x17f   : > { %v1476_v29 = vpop.eup %1100  ;;  %v687_v30 = vmul.f32 0.5, %v1099_v24  ;;  %v695_v35 = vadd.f32 0.5, %v679_v26  ;;  %1120 = vtanh.f32 %v650_v27  ;;  %v733_v46 = vmul.f32 %v1482_v33, %v710_v37 }
 0x180   : > { %v1484_v34 = vpop.eup %1102  ;;  %1122 = vtanh.f32 %v658_v31  ;;  %v651_v40 = vmul.f32 0.5, %v578_v32  ;;  %v659_v43 = vmul.f32 0.5, %v618_v36  ;;  %v581_v44 = vpop.f32.mrb[12].mxu0  ;;  %v741_v17 = vmul.f32 %v1482_v33, %v718_v41 }
 0x181   : > { %v1105_v38 = vpop.eup %1104  ;;  %1124 = vtanh.f32 %v576_v28  ;;  %v621_v45 = vpop.f32.mrb[12].mxu1  ;;  %v711_v47 = vmul.f32 %v1089_v1, %v695_v35  ;;  %v582_v50 = vadd.f32 %v581_v44, %v1449_v22  ;;  %v703_v53 = vadd.f32 0.5, %v687_v30  ;;  %749 = vadd.xlane.f32.xlu0 %v733_v46 }
 0x182   : > { %v1107_v42 = vpop.eup %1106  ;;  %1126 = vtanh.f32 %v651_v40  ;;  %v583_v51 = vpop.f32.mrb[13].mxu0  ;;  %v622_v62 = vadd.f32 %v621_v45, %v1449_v22 }
 0x183   : > { %v1109_v48 = vpop.eup %1108  ;;  %v680_v49 = vmul.f32 0.5, %v1107_v42  ;;  %v623_v52 = vpop.f32.mrb[13].mxu1  ;;  %1128 = vtanh.f32 %v659_v43  ;;  %v584_v56 = vadd.f32 %v583_v51, %v1451_v23  ;;  %v719_v11 = vmul.f32 %v1471_v12, %v703_v53 }
 0x184   : > { %v1111_v54 = vpop.eup %1110  ;;  %v688_v55 = vmul.f32 0.5, %v1109_v48  ;;  %v624_v57 = vadd.f32 %v623_v52, %v1451_v23  ;;  %v585_v58 = vpop.f32.mrb[14].mxu0  ;;  %1130 = vtanh.f32 %v616_v39  ;;  %v734_v35 = vmul.f32 %v1482_v33, %v711_v47 }
 0x185   : > { %v625_v59 = vpop.f32.mrb[14].mxu1  ;;  %v1113_v60 = vpop.eup %1112  ;;  %v696_v61 = vadd.f32 0.5, %v680_v49  ;;  %1132 = vtanh.f32 %v582_v50  ;;  %v652_v3 = vmul.f32 0.5, %v584_v56  ;;  %v586_v4 = vadd.f32 %v585_v58, %v1449_v22  ;;  %765 = vadd.xlane.f32.xlu0 %v741_v17 }
 0x186   : > { %v627_v63 = vpop.f32.mrb[15].mxu1  ;;  %v587_v0 = vpop.f32.mrb[15].mxu0  ;;  %v681_v2 = vmul.f32 0.5, %v1113_v60  ;;  %v704_v6 = vadd.f32 0.5, %v688_v55  ;;  %v660_v8 = vmul.f32 0.5, %v624_v57  ;;  %v742_v19 = vmul.f32 %v1482_v33, %v719_v11 }
 0x187   : > { %v1115_v1 = vpop.eup %1114  ;;  %v628_v9 = vadd.f32 %v627_v63, %v1451_v23  ;;  %1134 = vtanh.f32 %v652_v3  ;;  %v588_v13 = vadd.f32 %v587_v0, %v1451_v23  ;;  %v712_v21 = vmul.f32 %v1476_v29, %v696_v61 }
 0x188   : > { %v1117_v5 = vpop.eup %1116  ;;  %v689_v7 = vmul.f32 0.5, %v1115_v1  ;;  %v697_v10 = vadd.f32 0.5, %v681_v2  ;;  %1136 = vtanh.f32 %v660_v8  ;;  %v626_v26 = vadd.f32 %v625_v59, %v1449_v22  ;;  %767 = vadd.xlane.f32.xlu1 %v742_v19 }
 0x189   : > { %v1119_v14 = vpop.eup %1118  ;;  %v661_v16 = vmul.f32 0.5, %v628_v9  ;;  %1138 = vtanh.f32 %v622_v62  ;;  %v653_v20 = vmul.f32 0.5, %v588_v13  ;;  %v735_v28 = vmul.f32 %v1482_v33, %v712_v21  ;;  %751 = vadd.xlane.f32.xlu0 %v734_v35  ;;  %v945_v13 = vld [vmem:[#allocation2] ss:$0 sm:$0xff] }
 0x18a   : > { %v705_v15 = vadd.f32 0.5, %v689_v7  ;;  %v1121_v18 = vpop.eup %1120  ;;  %v713_v23 = vmul.f32 %v1105_v38, %v697_v10  ;;  %v720_v30 = vmul.f32 %v1484_v34, %v704_v6 }
 0x18b   : > { %v1123_v24 = vpop.eup %1122  ;;  %v682_v25 = vmul.f32 0.5, %v1121_v18  ;;  %1140 = vtanh.f32 %v661_v16 }
 0x18c   : > { %v1125_v12 = vpop.eup %1124  ;;  %v690_v27 = vmul.f32 0.5, %v1123_v24  ;;  %1142 = vtanh.f32 %v653_v20  ;;  %v721_v29 = vmul.f32 %v1111_v54, %v705_v15  ;;  %753 = vadd.xlane.f32.xlu1 %v735_v28  ;;  %v743_v34 = vmul.f32 %v1482_v33, %v720_v30 }
 0x18d   : > { %v1127_v31 = vpop.eup %1126  ;;  %v698_v32 = vadd.f32 0.5, %v682_v25  ;;  %1144 = vtanh.f32 %v626_v26  ;;  %v736_v46 = vmul.f32 %v1482_v33, %v713_v23 }
 0x18e   : > { %v1129_v36 = vpop.eup %1128  ;;  %v706_v37 = vadd.f32 0.5, %v690_v27  ;;  %v683_v39 = vmul.f32 0.5, %v1127_v31  ;;  %1146 = vtanh.f32 %v586_v4  ;;  %769 = vadd.xlane.f32.xlu0 %v743_v34  ;;  %v744_v59 = vmul.f32 %v1482_v33, %v721_v29 }
 0x18f   : > { %v1131_v22 = vpop.eup %1130  ;;  %v691_v40 = vmul.f32 0.5, %v1129_v36  ;;  %v714_v38 = vmul.f32 %v1117_v5, %v698_v32 }
 0x190   : > { %v1133_v41 = vpop.eup %1132  ;;  %v699_v42 = vadd.f32 0.5, %v683_v39  ;;  %v722_v43 = vmul.f32 %v1119_v14, %v706_v37  ;;  %755 = vadd.xlane.f32.xlu1 %v736_v46 }
 0x191   : > { %v707_v44 = vadd.f32 0.5, %v691_v40  ;;  %v1135_v45 = vpop.eup %1134  ;;  %v737_v50 = vmul.f32 %v1482_v33, %v714_v38 }
 0x192   : > { %v715_v47 = vmul.f32 %v1125_v12, %v699_v42  ;;  %v1137_v48 = vpop.eup %1136  ;;  %v684_v49 = vmul.f32 0.5, %v1135_v45  ;;  %v745_v2 = vmul.f32 %v1482_v33, %v722_v43 }
 0x193   : > { %v723_v51 = vmul.f32 %v1131_v22, %v707_v44  ;;  %v1139_v52 = vpop.eup %1138  ;;  %v692_v53 = vmul.f32 0.5, %v1137_v48  ;;  %757 = vadd.xlane.f32.xlu0 %v737_v50 }
 0x194   : > { %v700_v55 = vadd.f32 0.5, %v684_v49  ;;  %771 = vadd.xlane.f32.xlu1 %v744_v59  ;;  %v738_v4 = vmul.f32 %v1482_v33, %v715_v47 }
 0x195   : > { %v1141_v54 = vpop.eup %1140  ;;  %v708_v57 = vadd.f32 0.5, %v692_v53  ;;  %v746_v8 = vmul.f32 %v1482_v33, %v723_v51 }
 0x196   : > { %v1143_v56 = vpop.eup %1142  ;;  %v693_v58 = vmul.f32 0.5, %v1141_v54  ;;  %v716_v61 = vmul.f32 %v1133_v41, %v700_v55 }
 0x197   : > { %v685_v60 = vmul.f32 0.5, %v1143_v56  ;;  %v724_v63 = vmul.f32 %v1139_v52, %v708_v57  ;;  %v1145_v0 = vpop.eup %1144  ;;  %773 = vadd.xlane.f32.xlu0 %v745_v2 }
 0x198   : > { %v709_v62 = vadd.f32 0.5, %v693_v58  ;;  %v1147_v3 = vpop.eup %1146  ;;  %v739_v6 = vmul.f32 %v1482_v33, %v716_v61  ;;  %759 = vadd.xlane.f32.xlu1 %v738_v4 }
 0x199   : > { %v701_v1 = vadd.f32 0.5, %v685_v60  ;;  %v747_v9 = vmul.f32 %v1482_v33, %v724_v63 }
 0x19a   : > { %v725_v5 = vmul.f32 %v1145_v0, %v709_v62 }
 0x19b   : > { %v717_v7 = vmul.f32 %v1147_v3, %v701_v1  ;;  %761 = vadd.xlane.f32.xlu0 %v739_v6 }
 0x19c   : > { %775 = vadd.xlane.f32.xlu1 %v746_v8  ;;  %v748_v11 = vmul.f32 %v1482_v33, %v725_v5 }
 0x19d   : > { %v740_v10 = vmul.f32 %v1482_v33, %v717_v7 }
 0x19f   : > { %777 = vadd.xlane.f32.xlu0 %v747_v9 }
 0x1a0   : > { %763 = vadd.xlane.f32.xlu1 %v740_v10 }
 0x1a4   : > { %779 = vadd.xlane.f32.xlu1 %v748_v11 }
 0x20e   : > { %v750_v14 = vpop.xlane.xlu0 %749 }
 0x20f   : > { %v788_v33 = vadd.f32 %v945_v13, %v750_v14 }
 0x211   : > { %805 = vst.msk [vmem:[%s1520_s17] sm:$0xff] %vm804_vm0, %v788_v33 }
 0x212   : > { %v766_v15 = vpop.xlane.xlu0 %765 }
 0x213   : > { %v796_v17 = vadd.f32 %v945_v13, %v766_v15 }
 0x215   : > { %v768_v16 = vpop.xlane.xlu1 %767  ;;  %813 = vst.msk [vmem:[%s1520_s17 + $0x40] sm:$0xff] %vm804_vm0, %v796_v17 }
 0x216   : > { %v797_v18 = vadd.f32 %v945_v13, %v768_v16  ;;  %v752_v19 = vpop.xlane.xlu0 %751 }
 0x217   : > { %v789_v21 = vadd.f32 %v945_v13, %v752_v19 }
 0x218   : > { %814 = vst.msk [vmem:[%s1520_s17 + $0x48] sm:$0xff] %vm804_vm0, %v797_v18 }
 0x219   : > { %v754_v20 = vpop.xlane.xlu1 %753  ;;  %806 = vst.msk [vmem:[%s1520_s17 + $0x8] sm:$0xff] %vm804_vm0, %v789_v21 }
 0x21a   : > { %v790_v24 = vadd.f32 %v945_v13, %v754_v20 }
 0x21b   : > { %v770_v25 = vpop.xlane.xlu0 %769 }
 0x21c   : > { %807 = vst.msk [vmem:[%s1520_s17 + $0x10] sm:$0xff] %vm804_vm0, %v790_v24  ;;  %v798_v23 = vadd.f32 %v945_v13, %v770_v25 }
 0x21d   : > { %v756_v26 = vpop.xlane.xlu1 %755 }
 0x21e   : > { %v791_v12 = vadd.f32 %v945_v13, %v756_v26  ;;  %815 = vst.msk [vmem:[%s1520_s17 + $0x50] sm:$0xff] %vm804_vm0, %v798_v23 }
 0x220   : > { %808 = vst.msk [vmem:[%s1520_s17 + $0x18] sm:$0xff] %vm804_vm0, %v791_v12  ;;  %v758_v27 = vpop.xlane.xlu0 %757 }
 0x221   : > { %v772_v28 = vpop.xlane.xlu1 %771  ;;  %v792_v30 = vadd.f32 %v945_v13, %v758_v27 }
 0x222   : > { %v799_v31 = vadd.f32 %v945_v13, %v772_v28 }
 0x223   : > { %809 = vst.msk [vmem:[%s1520_s17 + $0x20] sm:$0xff] %vm804_vm0, %v792_v30 }
 0x224   : > { %816 = vst.msk [vmem:[%s1520_s17 + $0x58] sm:$0xff] %vm804_vm0, %v799_v31  ;;  %v774_v32 = vpop.xlane.xlu0 %773 }
 0x225   : > { %v760_v35 = vpop.xlane.xlu1 %759  ;;  %v800_v29 = vadd.f32 %v945_v13, %v774_v32 }
 0x226   : > { %v793_v36 = vadd.f32 %v945_v13, %v760_v35 }
 0x227   : > { %817 = vst.msk [vmem:[%s1520_s17 + $0x60] sm:$0xff] %vm804_vm0, %v800_v29 }
 0x228   : > { %810 = vst.msk [vmem:[%s1520_s17 + $0x28] sm:$0xff] %vm804_vm0, %v793_v36  ;;  %v762_v37 = vpop.xlane.xlu0 %761 }
 0x229   : > { %v776_v39 = vpop.xlane.xlu1 %775  ;;  %v794_v22 = vadd.f32 %v945_v13, %v762_v37 }
 0x22a   : > { %v801_v40 = vadd.f32 %v945_v13, %v776_v39 }
 0x22b   : > { %811 = vst.msk [vmem:[%s1520_s17 + $0x30] sm:$0xff] %vm804_vm0, %v794_v22 }
 0x22c   : > { %818 = vst.msk [vmem:[%s1520_s17 + $0x68] sm:$0xff] %vm804_vm0, %v801_v40  ;;  %v778_v38 = vpop.xlane.xlu0 %777 }
 0x22d   : > { %v764_v41 = vpop.xlane.xlu1 %763  ;;  %v802_v42 = vadd.f32 %v945_v13, %v778_v38 }
 0x22e   : > { %v795_v43 = vadd.f32 %v945_v13, %v764_v41 }
 0x22f   : > { %819 = vst.msk [vmem:[%s1520_s17 + $0x70] sm:$0xff] %vm804_vm0, %v802_v42 }
 0x230   : > { %812 = vst.msk [vmem:[%s1520_s17 + $0x38] sm:$0xff] %vm804_vm0, %v795_v43 }
 0x231   : > { %v780_v44 = vpop.xlane.xlu1 %779 }
 0x232   : > { %v803_v34 = vadd.f32 %v945_v13, %v780_v44 }
 0x234   : > { %820 = vst.msk [vmem:[%s1520_s17 + $0x78] sm:$0xff] %vm804_vm0, %v803_v34 }
 0x235 PF: > { %s1585_s23 = smov %s1358_s20  ;;  %p18_p6 = scmp.ge.s32.totalorder %s1332_s30, 4  }
 0x236   : > { %s1586_s20 = smov %s1236_s21  ;;  %s1587_s21 = smov %s1240_s22 }
 0x237   : > { %s1588_s22 = smov %s1585_s23  ;;  %s1589_s23 = smov %s1332_s30 }
 0x238   :  { %20 = sbr.rel (!%p18_p6) target bundleno = 7 (0x7), region = 84 }
 0x23f   :  { %843 = vsyncpa [#allocation4], 1 }
 0x240   :  { %845 = vsyncpa [#allocation4 + $0x1], 1 }
 0x241   :  { %846 = vsyncpa [#allocation6], 1 }

</bundles_post_ra>
